<compile_context>
chip_gen: v7x
topology: tpu7x:2x2x1
jax: 0.10.0
libtpu: 0.0.40
codegen_flags: <defaults>
</compile_context>

<pallas_src>
import functools
import math

import jax
import jax.numpy as jnp
from jax import lax
from jax.experimental import pallas as pl
from jax.experimental.pallas import tpu as pltpu


def _memory_queue_kernel(x_ref, mem_ref, out_ref, *, shrink_thres, epsilon,
                         matmul_dtype):
    """One N-tile: x_ref [tile_n, C] (input dtype), mem_ref [m_pad, C] (resident),
    out_ref [tile_n, C]."""
    # Cast to the MXU feed dtype in-kernel (no separate wrapper cast pass).
    x = x_ref[...].astype(matmul_dtype)
    mem = mem_ref[...]                                    # matmul dtype

    # att = x @ mem.T  -- contract dim 1 of both operands; no transpose is
    # materialized, accumulate in f32.  m_pad is a multiple of 128, so att is
    # lane-dense.
    att = lax.dot_general(
        x, mem,
        dimension_numbers=(((1,), (1,)), ((), ())),
        preferred_element_type=jnp.float32,
    )                                                     # [tile_n, m_pad] f32

    # hard_shrink_relu(att, lambd=shrink_thres); elementwise stays f32 (VPU),
    # the divide goes to the EUP via approximate reciprocal (safe: relu(diff)
    # zeroes exactly the region where the denominator ~ eps).
    diff = att - shrink_thres
    att = (jnp.maximum(diff, 0.0) * att) * pl.reciprocal(
        jnp.abs(diff) + epsilon, approx=True)

    # F.normalize(att, p=1, dim=1).  Post-shrink att >= 0, so the L1 norm is a
    # plain row sum (no abs).  Exact reciprocal for the normalization.
    l1 = jnp.sum(att, axis=1, keepdims=True)
    att = att * pl.reciprocal(jnp.maximum(l1, 1e-12), approx=False)

    # out = att @ mem   [tile_n, C]; padded slots have att == 0, contribute 0.
    out = jnp.dot(att.astype(mem.dtype), mem, preferred_element_type=jnp.float32)
    out_ref[...] = out.astype(out_ref.dtype)


def _default_vmem_budget():
    """~75% of physical VMEM per TensorCore (96 MiB on v5e/v6e, 48 MiB on v7x)."""
    try:
        cap = int(pltpu.get_tpu_info().vmem_capacity_bytes)
    except Exception:
        cap = 64 * 1024 * 1024   # conservative (v7x-sized) fallback
    return (cap * 3) // 4


def memory_queue_forward(x, mem_matrix, shrink_thres=0.0025, epsilon=1e-12,
                         *, matmul_dtype=jnp.bfloat16, out_dtype=None,
                         tile_n=None, vmem_limit_bytes=None):
    """x: [N, C], mem_matrix: [M, C] -> [N, C] (out_dtype, default x.dtype)."""
    N, C = x.shape
    M, C2 = mem_matrix.shape
    assert C == C2, "query dim must match slot_dim"
    if out_dtype is None:
        out_dtype = x.dtype
    if vmem_limit_bytes is None:
        vmem_limit_bytes = _default_vmem_budget()

    in_bytes = jnp.dtype(matmul_dtype).itemsize
    x_bytes = jnp.dtype(x.dtype).itemsize
    out_bytes = jnp.dtype(out_dtype).itemsize

    # Pad the slot axis (M) to a multiple of 128 with zero rows.  memMatrix is
    # small relative to the streamed x/out, so this one-time cast+pad is cheap;
    # it makes att lane-dense and both MXU passes full width.  Numerically
    # exact (padded slots -> att column 0 -> shrink 0 -> contributes 0).
    m_pad = ((M + 127) // 128) * 128
    mem_in = mem_matrix.astype(matmul_dtype)
    if m_pad != M:
        mem_in = jnp.pad(mem_in, ((0, m_pad - M), (0, 0)))

    # Resident-memMatrix requirement (counted x2: double-buffer worst case).
    if 2 * m_pad * C * in_bytes > vmem_limit_bytes // 2:
        # TODO(synk): M-tiled two-pass path for memory banks that don't fit VMEM.
        raise ValueError("memMatrix too large for the resident-VMEM path")

    def _vmem_est(t):
        return (2 * m_pad * C * in_bytes      # resident memMatrix (x2 worst case)
                + 2 * t * C * x_bytes         # double-buffered x tiles
                + 2 * t * C * out_bytes       # double-buffered out tiles
                + t * C * in_bytes            # in-kernel cast of x
                + t * m_pad * 4               # f32 att intermediate
                + t * m_pad * in_bytes)       # att cast for the second matmul

    # tile_n: stream >= ~2 MiB of x+out per grid step, rounded to 256, clamped
    # by the VMEM budget.  Small N -> single tile (full array dim is a legal
    # block dim regardless of the (8,128) rule).
    if tile_n is None:
        tgt = max(1, (2 * 1024 * 1024) // max(1, C * (x_bytes + out_bytes)))
        tile_n = min(2048, max(256, tgt))
    tile_n = min(tile_n, N)
    if tile_n < N:
        tile_n = max(256, (tile_n // 256) * 256)
        while tile_n > 256 and _vmem_est(tile_n) > vmem_limit_bytes:
            tile_n -= 256
        tile_n = min(tile_n, N)

    grid = (pl.cdiv(N, tile_n),)

    kernel = functools.partial(
        _memory_queue_kernel,
        shrink_thres=float(shrink_thres),
        epsilon=float(epsilon),
        matmul_dtype=matmul_dtype,
    )

    out = pl.pallas_call(
        kernel,
        out_shape=jax.ShapeDtypeStruct((N, C), out_dtype),
        grid_spec=pl.GridSpec(
            grid=grid,
            in_specs=[
                pl.BlockSpec((tile_n, C), lambda i: (i, 0)),   # x tile (raw dtype)
                pl.BlockSpec((m_pad, C), lambda i: (0, 0)),    # memMatrix (resident)
            ],
            out_specs=pl.BlockSpec((tile_n, C), lambda i: (i, 0)),
        ),
        compiler_params=pltpu.CompilerParams(
            dimension_semantics=("parallel",),    # independent N-tiles (megacore)
            vmem_limit_bytes=int(vmem_limit_bytes),
        ),
    )(x, mem_in)

    return out


def reference_forward(x, mem_matrix, shrink_thres=0.0025, epsilon=1e-12):
    """Pure-JAX reference mirroring the PyTorch module (f32, exact divides)."""
    att = x @ mem_matrix.T
    diff = att - shrink_thres
    att = jnp.maximum(diff, 0.0) * att / (jnp.abs(diff) + epsilon)
    l1 = jnp.sum(jnp.abs(att), axis=1, keepdims=True)
    att = att / jnp.maximum(l1, 1e-12)
    return att @ mem_matrix


if __name__ == "__main__":
    # Small, module-consistent shapes: N query items, C = slot_dim, M = num_slots.
    num_slots = 64      # M  (padded to 128 inside the wrapper)
    slot_dim = 32       # C
    num_queries = 24    # N  -> single tile (tile_n = N)

    key = jax.random.PRNGKey(0)
    k_mem, k_x = jax.random.split(key)

    # reset_parameters(): memMatrix ~ U(-stdv, stdv), stdv = 1/sqrt(slot_dim)
    stdv = 1.0 / math.sqrt(slot_dim)
    mem_matrix = jax.random.uniform(
        k_mem, (num_slots, slot_dim), dtype=jnp.float32, minval=-stdv, maxval=stdv
    )
    x = jax.random.normal(k_x, (num_queries, slot_dim), dtype=jnp.float32)

    ref = jax.block_until_ready(reference_forward(x, mem_matrix, 0.0025))

    # f32-fed MXU path (tight check; only approx-reciprocal differs from ref).
    out_f32 = memory_queue_forward(
        x, mem_matrix, shrink_thres=0.0025, matmul_dtype=jnp.float32
    )
    out_f32 = jax.block_until_ready(out_f32)
    assert out_f32.shape == x.shape
    assert jnp.allclose(out_f32, ref, atol=1e-3, rtol=1e-2), "f32 path mismatch"

    # Default bf16-fed MXU path (fast path on v6e/v7x); f32 accumulate, so the
    # error is bf16 input rounding (can flip hard-shrink near the 0.0025
    # threshold) -> relaxed tolerance.  Use matmul_dtype=f32 when exact
    # sparsity matters.
    out_bf16 = memory_queue_forward(x, mem_matrix, shrink_thres=0.0025)
    out_bf16 = jax.block_until_ready(out_bf16)
    assert out_bf16.shape == x.shape
    assert jnp.allclose(out_bf16, ref, atol=3e-3, rtol=5e-2), "bf16 path mismatch"

    # bf16-output path (halves writeback traffic); just check it runs + is close.
    out_bf16_out = memory_queue_forward(
        x, mem_matrix, shrink_thres=0.0025, out_dtype=jnp.bfloat16
    )
    out_bf16_out = jax.block_until_ready(out_bf16_out)
    assert out_bf16_out.shape == x.shape
    assert jnp.allclose(out_bf16_out.astype(jnp.float32), ref,
                        atol=2e-2, rtol=1e-1), "bf16-output path mismatch"

    print("KERNEL_OK")
</pallas_src>

<mosaic_0001>
module attributes {stable_mosaic.version = 11 : i64} {
  func.func @_memory_queue_kernel(%arg0: i32, %arg1: memref<24x32xf32, #tpu.memory_space<vmem>>, %arg2: memref<128x32xf32, #tpu.memory_space<vmem>>, %arg3: memref<24x32xf32, #tpu.memory_space<vmem>>) attributes {dimension_semantics = [#tpu.dimension_semantics<parallel>], iteration_bounds = array<i64: 1>, scalar_prefetch = 0 : i64, scratch_operands = 0 : i64, tpu.core_type = #tpu.core_type<tc>, window_params = [{transform_indices = @transform_0, window_bounds = array<i64: 24, 32>}, {pipeline_mode = #tpu.pipeline_mode<synchronous>, transform_indices = @transform_1, window_bounds = array<i64: 128, 32>}, {transform_indices = @transform_2, window_bounds = array<i64: 24, 32>}]} {
    %c0 = arith.constant 0 : index
    %c0_0 = arith.constant 0 : index
    %0 = vector.load %arg1[%c0, %c0_0] : memref<24x32xf32, #tpu.memory_space<vmem>>, vector<24x32xf32>
    %c0_1 = arith.constant 0 : index
    %c0_2 = arith.constant 0 : index
    %1 = vector.load %arg2[%c0_1, %c0_2] : memref<128x32xf32, #tpu.memory_space<vmem>>, vector<128x32xf32>
    %cst = arith.constant dense<0.000000e+00> : vector<24x128xf32>
    %2 = tpu.matmul %0, %1, %cst {dimension_numbers = #tpu.dot_dimension_numbers<[1], [1], [0], [0], [0, 0, 1, 0], [], []>} : vector<24x32xf32>, vector<128x32xf32>, vector<24x128xf32> -> vector<24x128xf32>
    %cst_3 = arith.constant 2.500000e-03 : f32
    %3 = vector.broadcast %cst_3 : f32 to vector<24x128xf32>
    %4 = arith.subf %2, %3 : vector<24x128xf32>
    %cst_4 = arith.constant 0.000000e+00 : f32
    %5 = vector.broadcast %cst_4 : f32 to vector<24x128xf32>
    %6 = arith.maximumf %4, %5 : vector<24x128xf32>
    %7 = arith.mulf %6, %2 : vector<24x128xf32>
    %8 = math.absf %4 : vector<24x128xf32>
    %cst_5 = arith.constant 9.99999996E-13 : f32
    %9 = vector.broadcast %cst_5 : f32 to vector<24x128xf32>
    %10 = arith.addf %8, %9 : vector<24x128xf32>
    %11 = tpu.reciprocal %10 {approx = true} : vector<24x128xf32> -> vector<24x128xf32>
    %12 = arith.mulf %7, %11 : vector<24x128xf32>
    %cst_6 = arith.constant dense<0.000000e+00> : vector<24xf32>
    %13 = vector.multi_reduction <add>, %12, %cst_6 [1] : vector<24x128xf32> to vector<24xf32>
    %14 = vector.shape_cast %13 : vector<24xf32> to vector<24x1xf32>
    %cst_7 = arith.constant 9.99999996E-13 : f32
    %15 = vector.broadcast %cst_7 : f32 to vector<24x1xf32>
    %16 = arith.maximumf %14, %15 : vector<24x1xf32>
    %17 = tpu.reciprocal %16 : vector<24x1xf32> -> vector<24x1xf32>
    %18 = vector.broadcast %17 : vector<24x1xf32> to vector<24x128xf32>
    %19 = arith.mulf %12, %18 : vector<24x128xf32>
    %cst_8 = arith.constant dense<0.000000e+00> : vector<24x32xf32>
    %20 = tpu.matmul %19, %1, %cst_8 {dimension_numbers = #tpu.dot_dimension_numbers<[1], [0], [0], [1], [0, 0, 1, 1], [], []>} : vector<24x128xf32>, vector<128x32xf32>, vector<24x32xf32> -> vector<24x32xf32>
    %c0_9 = arith.constant 0 : index
    %c0_10 = arith.constant 0 : index
    %21 = vector.load %arg3[%c0_9, %c0_10] : memref<24x32xf32, #tpu.memory_space<vmem>>, vector<24x32xf32>
    tpu.vector_store %arg3[%c0_9, %c0_10], %20 {strides = array<i32>} : memref<24x32xf32, #tpu.memory_space<vmem>>, vector<24x32xf32>,
    return
  }
  func.func @transform_0(%arg0: i32) -> (i32, i32) {
    %c0_i32 = arith.constant 0 : i32
    %c0_i32_0 = arith.constant 0 : i32
    return %arg0, %c0_i32 : i32, i32
  }
  func.func @transform_1(%arg0: i32) -> (i32, i32) {
    %c0_i32 = arith.constant 0 : i32
    %c0_i32_0 = arith.constant 0 : i32
    %c0_i32_1 = arith.constant 0 : i32
    return %c0_i32, %c0_i32_0 : i32, i32
  }
  func.func @transform_2(%arg0: i32) -> (i32, i32) {
    %c0_i32 = arith.constant 0 : i32
    %c0_i32_0 = arith.constant 0 : i32
    return %arg0, %c0_i32 : i32, i32
  }
}

</mosaic_0001>

<bundles_post_ra>
// kernel: tpu_custom_call.1
= control target key start
LH: loop header
LB: loop body
LE: loop exit
PB: predicated region body
PF: predicated region fallthrough
CT: control target
= control target key end

     0   :  { %vm31_vm0 = vcmask 261120   ;;  %v544_v2 = vmov 0.0|0.0   ;;  %vm545_vm2 = vmmov 0   ;;  %v546_v7 = vmov 0.0   ;;  %s674_s0 = inlined_call_operand.vmem [shape: f32[24,32], index: 0, kind: input, shape index: {}]   ;;  %s675_s1 = inlined_call_operand.vmem [shape: f32[128,32], index: 1, kind: input, shape index: {}]   ;;  %s676_s2 = inlined_call_operand.hbm [shape: f32[24,32], index: 2, kind: output, shape index: {}]  }
   0x1   :  { %v15_v0 = vld [vmem:[%s675_s1] sm:$0xff]  ;;  %v16_v1 = vld [vmem:[%s675_s1 + $0x8] sm:$0xff]  ;;  %446 = vmatprep.subr.bf16.mxu0 %v544_v2  ;;  %vm573_vm1 = vmpackc.low %vm31_vm0, %vm31_vm0  ;;  %478 = vmatprep.subr.bf16.mxu1 %v544_v2 }
   0x2   :  { %v447_v3 = vpack.c.bf16 %v16_v1, %v15_v0  ;;  %v17_v5 = vld [vmem:[%s675_s1 + $0x10] sm:$0xff]  ;;  %v18_v6 = vld [vmem:[%s675_s1 + $0x18] sm:$0xff]  ;;  %396 = vmatprep.mubr.msk.f32.mxu0 %vm545_vm2, %v546_v7  ;;  %437 = vmatprep.mubr.msk.f32.mxu1 %vm545_vm2, %v546_v7  ;;  %v19_v9 = vld [vmem:[%s675_s1 + $0x20] sm:$0xff] }
   0x3   :  { %v451_v8 = vpack.c.bf16 %v18_v6, %v17_v5  ;;  %v20_v10 = vld [vmem:[%s675_s1 + $0x28] sm:$0xff] }
   0x4   :  { %449 = vmatpush3.bf16.xpose.msk.msra.mxu0 %vm573_vm1, %v447_v3  ;;  %480 = vmatpush3.bf16.msra.mxu1 %v447_v3 }
   0x5   :  { %450 = vmatprep.subr.bf16.mxu0 %v544_v2  ;;  %481 = vmatprep.subr.bf16.mxu1 %v544_v2 }
   0x6   :  { %7 = vsyncpa [#allocation3], 0  ;;  %v455_v11 = vpack.c.bf16 %v20_v10, %v19_v9  ;;  %v21_v12 = vld [vmem:[%s675_s1 + $0x30] sm:$0xff]  ;;  %v22_v13 = vld [vmem:[%s675_s1 + $0x38] sm:$0xff] }
   0x7   :  { %v459_v14 = vpack.c.bf16 %v22_v13, %v21_v12  ;;  %v23_v15 = vld [vmem:[%s675_s1 + $0x40] sm:$0xff]  ;;  %v24_v16 = vld [vmem:[%s675_s1 + $0x48] sm:$0xff]  ;;  %v25_v18 = vld [vmem:[%s675_s1 + $0x50] sm:$0xff] }
   0x8   :  { %483 = vmatpush3.bf16.msra.mxu1 %v451_v8  ;;  %v463_v17 = vpack.c.bf16 %v24_v16, %v23_v15  ;;  %v26_v19 = vld [vmem:[%s675_s1 + $0x58] sm:$0xff]  ;;  %v27_v21 = vld [vmem:[%s675_s1 + $0x60] sm:$0xff]  ;;  %v28_v22 = vld [vmem:[%s675_s1 + $0x68] sm:$0xff] }
   0x9   :  { %484 = vmatprep.subr.bf16.mxu1 %v544_v2  ;;  %v467_v20 = vpack.c.bf16 %v26_v19, %v25_v18  ;;  %v471_v23 = vpack.c.bf16 %v28_v22, %v27_v21  ;;  %v29_v24 = vld [vmem:[%s675_s1 + $0x70] sm:$0xff]  ;;  %v30_v25 = vld [vmem:[%s675_s1 + $0x78] sm:$0xff]  ;;  %v12_v27 = vld [vmem:[%s674_s0] sm:$0xff] }
   0xa   :  { %v475_v26 = vpack.c.bf16 %v30_v25, %v29_v24  ;;  %v13_v28 = vld [vmem:[%s674_s0 + $0x8] sm:$0xff]  ;;  %v14_v29 = vld [vmem:[%s674_s0 + $0x10] sm:$0xff]  ;;  %s547_s0 = smov [#allocation2]  }
   0xb   :  { %s293_s18 = sshll.u32 %s547_s0, 4  ;;  %s294_s18 = int_to_ptr.vmem [resolvable:$true] %s293_s18 }
   0xc   :  { %453 = vmatpush3.bf16.xpose.msk.msra.mxu0 %vm573_vm1, %v451_v8  ;;  %486 = vmatpush3.bf16.msra.mxu1 %v455_v11  ;;  %s520_s19 = scalar_lea.vmem %s294_s18, 384  ;;  %p525_p1 = scmp.lt.s32.totalorder %s294_s18, %s294_s18 }
   0xd   :  { %454 = vmatprep.subr.bf16.mxu0 %v544_v2  ;;  %487 = vmatprep.subr.bf16.mxu1 %v544_v2  ;;  %p521_p0 = scmp.ne.s32.totalorder %s294_s18, %s520_s19  ;;  %p526_p2 = scmp.lt.s32.totalorder %s520_s19, %s520_s19 }
   0xf   :  { %p527_p3 = por %p526_p2, %p525_p1 }
  0x10   :  { %489 = vmatpush3.bf16.msra.mxu1 %v459_v14 }
  0x11   :  { %490 = vmatprep.subr.bf16.mxu1 %v544_v2  ;;  %p528_p4 = pnand %p527_p3, %p521_p0 }
  0x14   :  { %457 = vmatpush3.bf16.xpose.msk.msra.mxu0 %vm573_vm1, %v455_v11  ;;  %492 = vmatpush3.bf16.msra.mxu1 %v463_v17 }
  0x15   :  { %458 = vmatprep.subr.bf16.mxu0 %v544_v2  ;;  %493 = vmatprep.subr.bf16.mxu1 %v544_v2 }
  0x18   :  { %495 = vmatpush3.bf16.msra.mxu1 %v467_v20 }
  0x19   :  { %496 = vmatprep.subr.bf16.mxu1 %v544_v2 }
  0x1c   :  { %461 = vmatpush3.bf16.xpose.msk.msra.mxu0 %vm573_vm1, %v459_v14  ;;  %498 = vmatpush3.bf16.msra.mxu1 %v471_v23 }
  0x1d   :  { %462 = vmatprep.subr.bf16.mxu0 %v544_v2  ;;  %499 = vmatprep.subr.bf16.mxu1 %v544_v2 }
  0x20   :  { %501 = vmatpush3.bf16.msra.mxu1 %v475_v26 }
  0x24   :  { %465 = vmatpush3.bf16.xpose.msk.msra.mxu0 %vm573_vm1, %v463_v17 }
  0x25   :  { %466 = vmatprep.subr.bf16.mxu0 %v544_v2 }
  0x2c   :  { %469 = vmatpush3.bf16.xpose.msk.msra.mxu0 %vm573_vm1, %v467_v20 }
  0x2d   :  { %470 = vmatprep.subr.bf16.mxu0 %v544_v2 }
  0x34   :  { %473 = vmatpush3.bf16.xpose.msk.msra.mxu0 %vm573_vm1, %v471_v23 }
  0x35   :  { %474 = vmatprep.subr.bf16.mxu0 %v544_v2 }
  0x3c   :  { %477 = vmatpush3.bf16.xpose.msk.msra.mxu0 %vm573_vm1, %v475_v26 }
  0x43   :  { %397 = vmatmul.mubr.msk.f32.vlgmr.msra.gmra.mrb[0].mxu0 %vm31_vm0, %v12_v27 }
  0x44   :  { %399 = vmatprep.mubr.msk.f32.mxu0 %vm545_vm2, %v546_v7 }
  0x47   :  { %400 = vmatmul.mubr.msk.f32.gmra.mrb[2].mxu0 %vm31_vm0, %v13_v28 }
  0x48   :  { %402 = vmatprep.mubr.msk.f32.mxu0 %vm545_vm2, %v546_v7 }
  0x4b   :  { %403 = vmatmul.mubr.msk.f32.gmra.mrb[4].mxu0 %vm31_vm0, %v14_v29 }
 0x116   :  { %v155_v30 = vpop.f32.mrb[0].mxu0 }
 0x117   :  { %v323_v31 = vadd.f32 -0.0025, %v155_v30  ;;  %v398_v32 = vpop.f32.mrb[1].mxu0 }
 0x119   :  { %v178_v33 = vand.u32 2147483647, %v323_v31  ;;  %v172_v44 = vmax.f32 %v323_v31, 0.0 }
 0x11a   :  { %v160_v34 = vpop.f32.mrb[2].mxu0 }
 0x11b   :  { %v181_v35 = vadd.f32 1e-12, %v178_v33  ;;  %v324_v36 = vadd.f32 -0.0025, %v160_v34  ;;  %v401_v37 = vpop.f32.mrb[3].mxu0  ;;  %v175_v46 = vmul.f32 %v172_v44, %v155_v30 }
 0x11d   :  { %508 = vrcp.f32 %v181_v35  ;;  %v179_v38 = vand.u32 2147483647, %v324_v36  ;;  %v173_v47 = vmax.f32 %v324_v36, 0.0 }
 0x11e   :  { %v165_v39 = vpop.f32.mrb[4].mxu0 }
 0x11f   :  { %v182_v40 = vadd.f32 1e-12, %v179_v38  ;;  %v325_v41 = vadd.f32 -0.0025, %v165_v39  ;;  %v404_v42 = vpop.f32.mrb[5].mxu0  ;;  %v176_v50 = vmul.f32 %v173_v47, %v160_v34 }
 0x121   :  { %510 = vrcp.f32 %v182_v40  ;;  %v180_v43 = vand.u32 2147483647, %v325_v41  ;;  %v174_v51 = vmax.f32 %v325_v41, 0.0 }
 0x123   :  { %v183_v45 = vadd.f32 1e-12, %v180_v43  ;;  %v177_v54 = vmul.f32 %v174_v51, %v165_v39 }
 0x125   :  { %512 = vrcp.f32 %v183_v45 }
 0x127   :  { %v509_v48 = vpop.eup %508 }
 0x128   :  { %v187_v49 = vmul.f32 %v509_v48, %v175_v46 }
 0x12a   :  { %190 = vadd.xlane.f32.xlu0 %v187_v49 }
 0x12b   :  { %v511_v52 = vpop.eup %510 }
 0x12c   :  { %v188_v53 = vmul.f32 %v511_v52, %v176_v50 }
 0x12e   :  { %192 = vadd.xlane.f32.xlu0 %v188_v53 }
 0x12f   :  { %v513_v55 = vpop.eup %512 }
 0x130   :  { %v189_v56 = vmul.f32 %v513_v55, %v177_v54 }
 0x132   :  { %194 = vadd.xlane.f32.xlu1 %v189_v56 }
 0x1b7   :  { %v191_v57 = vpop.xlane.xlu0 %190 }
 0x1b8   :  { %v196_v58 = vmax.f32 %v191_v57, 1e-12 }
 0x1ba   :  { %514 = vrcp.f32 %v196_v58 }
 0x1bb   :  { %v193_v59 = vpop.xlane.xlu0 %192 }
 0x1bc   :  { %v197_v60 = vmax.f32 %v193_v59, 1e-12 }
 0x1be   :  { %516 = vrcp.f32 %v197_v60 }
 0x1bf   :  { %v195_v61 = vpop.xlane.xlu1 %194 }
 0x1c0   :  { %v198_v62 = vmax.f32 %v195_v61, 1e-12 }
 0x1c2   :  { %518 = vrcp.f32 %v198_v62 }
 0x1c4   :  { %v515_v63 = vpop.eup %514 }
 0x1c5   :  { %v202_v0 = vmul.f32 %v515_v63, %v187_v49 }
 0x1c7   :  { %438 = vmatmul.mubr.f32.vlgmr.msra.gmra.mrb[0].mxu1 %v202_v0 }
 0x1c8   :  { %v517_v1 = vpop.eup %516  ;;  %440 = vmatprep.mubr.msk.f32.mxu1 %vm545_vm2, %v546_v7 }
 0x1c9   :  { %v203_v2 = vmul.f32 %v517_v1, %v188_v53 }
 0x1cb   :  { %441 = vmatmul.mubr.f32.gmra.mrb[2].mxu1 %v203_v2 }
 0x1cc   :  { %v519_v3 = vpop.eup %518  ;;  %443 = vmatprep.mubr.msk.f32.mxu1 %vm545_vm2, %v546_v7 }
 0x1cd   :  { %v204_v4 = vmul.f32 %v519_v3, %v189_v56 }
 0x1cf   :  { %444 = vmatmul.mubr.f32.gmra.mrb[4].mxu1 %v204_v4 }
 0x29a   :  { %v271_v5 = vpop.f32.mrb[0].mxu1 }
 0x29b   :  { %285 = vst.msk [vmem:[#allocation2] sm:$0xff] %vm31_vm0, %v271_v5  ;;  %v439_v6 = vpop.f32.mrb[1].mxu1 }
 0x29e   :  { %v276_v8 = vpop.f32.mrb[2].mxu1 }
 0x29f   :  { %286 = vst.msk [vmem:[#allocation2 + $0x8] sm:$0xff] %vm31_vm0, %v276_v8  ;;  %v442_v9 = vpop.f32.mrb[3].mxu1 }
 0x2a2   :  { %v281_v10 = vpop.f32.mrb[4].mxu1 }
 0x2a3   :  { %287 = vst.msk [vmem:[#allocation2 + $0x10] sm:$0xff] %vm31_vm0, %v281_v10  ;;  %v445_v11 = vpop.f32.mrb[5].mxu1 }
 0x2a4   :  { %531 = shalt.err (!%p528_p4)
}
 0x2a5   :  { %s532_s22 = scalar_lea.hbm %s676_s2, 384 }
 0x2a6   :  { %p533_p5 = scmp.ne.s32.totalorder %s676_s2, %s532_s22  ;;  %p536_p6 = scmp.lt.u32.totalorder %s532_s22, %s676_s2 }
 0x2a8   :  { %p538_p7 = pnand %p536_p6, %p533_p5 }
 0x2aa   :  { %541 = shalt.err (!%p538_p7)
}
 0x2ab   :  { %s548_s27 = smov 128   ;;  %s549_s28 = smov 8  }
 0x2ac   :  { %299 = dma.vmem_to_hbm [thread:$0]  %s294_s18, 384, %s676_s2, [#allocation3], %s548_s27, %s548_s27, %s549_s28  }
 0x2ad   :  { %542 = dma.done.wait [#allocation3], 384  }
 0x2ae   :  { %543 = vsyncadd [#allocation3], 4294966912 }
 0x2af   :  { %303 = vsyncpa [#allocation3], 1 }

</bundles_post_ra>
